<compile_context>
chip_gen: v7x
topology: tpu7x:2x2x1
jax: 0.10.0
libtpu: 0.0.40
codegen_flags: <defaults>
</compile_context>

<pallas_src>
import jax
import jax.numpy as jnp
from jax.experimental import pallas as pl
from jax.experimental.pallas import tpu as pltpu

N_EMBD = 16
SLOPE = 0.2


def _leaky_relu(x, slope):
    return jnp.where(x > 0, x, slope * x)


def _round_up(x, m):
    return ((x + m - 1) // m) * m


def _trans_generator_kernel(z_ref, w1_ref, b1_ref, w2_ref, b2_ref, w3_ref, b3_ref,
                            out_ref):
    """Fused 3-layer MLP.

    I/O is in natural (batch, features) layout; compute is done feature-major
    (features, batch) so the batch tile sits on the 128-lane axis and the
    intermediates stay vreg-dense.

    z_ref   : (tb, n_embd)        natural-layout batch tile
    w*_ref  : (out_dim, in_dim)   PyTorch weight layout, VMEM-resident
    b*_ref  : (out_dim, 1)        broadcast along lanes (batch)
    out_ref : (tb, phase_dim)     natural-layout output tile
    """
    # Feature-dim transpose in-kernel (XLU work, hidden under the HBM DMA).
    zT = z_ref[...].T                                                   # (n_embd, tb)

    # Layer 1: Linear(n_embd -> n_embd) + LeakyReLU
    h1 = jnp.dot(w1_ref[...], zT, preferred_element_type=jnp.float32) + b1_ref[...]
    h1 = _leaky_relu(h1, SLOPE)

    # Layer 2: Linear(n_embd -> 2*n_embd) + LeakyReLU
    h2 = jnp.dot(w2_ref[...], h1, preferred_element_type=jnp.float32) + b2_ref[...]
    h2 = _leaky_relu(h2, SLOPE)

    # Layer 3: Linear(2*n_embd -> phase_dim), no activation
    h3 = jnp.dot(w3_ref[...], h2, preferred_element_type=jnp.float32) + b3_ref[...]

    # Transpose back to natural layout and write the lane-contiguous output tile.
    out_ref[...] = h3.T.astype(out_ref.dtype)                          # (tb, phase_dim)


def _choose_batch_tile(B, cap):
    """Pick the batch (sublane/lane) tile.

    * cap is rounded down to a multiple of 128 (satisfies the (8,128) rule and
      keeps the transposed compute lane-dense).
    * B <= 128: one block equal to the full batch dim (always legal).
    * B  > 128: tile ~= ceil(B/2) rounded up to 128, capped -> at least 2 grid
      tiles so both v7x TensorCores get work (no-op on v5e/v6e).
    """
    cap = max(128, (int(cap) // 128) * 128)
    if B <= 128:
        return B
    return min(cap, _round_up(pl.cdiv(B, 2), 128))


def trans_generator_forward(z, params, *, batch_tile=1024):
    """Fused TransGenerator forward pass as one gridded Pallas kernel.

    z:      (B, n_embd) float32
    params: dict with w1 (n_embd, n_embd),       b1 (n_embd, 1),
                      w2 (2*n_embd, n_embd),     b2 (2*n_embd, 1),
                      w3 (phase_dim, 2*n_embd),  b3 (phase_dim, 1)
            (PyTorch (out, in) weight layout.)
    returns: (B, phase_dim) float32
    """
    z = z.astype(jnp.float32)
    B, n_embd = z.shape
    phase_dim = params["w3"].shape[0]

    tb = _choose_batch_tile(B, batch_tile)
    grid = (pl.cdiv(B, tb),)

    w1, b1 = params["w1"], params["b1"]
    w2, b2 = params["w2"], params["b2"]
    w3, b3 = params["w3"], params["b3"]

    in_specs = [
        pl.BlockSpec((tb, n_embd), lambda i: (i, 0)),   # z: tiled over batch, natural layout
        pl.BlockSpec(w1.shape, lambda i: (0, 0)),       # weights/biases stay VMEM-resident
        pl.BlockSpec(b1.shape, lambda i: (0, 0)),
        pl.BlockSpec(w2.shape, lambda i: (0, 0)),
        pl.BlockSpec(b2.shape, lambda i: (0, 0)),
        pl.BlockSpec(w3.shape, lambda i: (0, 0)),
        pl.BlockSpec(b3.shape, lambda i: (0, 0)),
    ]
    out_spec = pl.BlockSpec((tb, phase_dim), lambda i: (i, 0))

    # Advisory cost estimate: this kernel is HBM-bound (~192 B/row), not MXU-bound.
    flops = 2 * B * (n_embd * n_embd + n_embd * 2 * n_embd + 2 * n_embd * phase_dim)
    weight_bytes = sum(int(a.size) * a.dtype.itemsize
                       for a in (w1, b1, w2, b2, w3, b3))
    bytes_accessed = B * (n_embd + phase_dim) * 4 + weight_bytes

    out = pl.pallas_call(
        _trans_generator_kernel,
        out_shape=jax.ShapeDtypeStruct((B, phase_dim), jnp.float32),
        grid=grid,
        in_specs=in_specs,
        out_specs=out_spec,
        compiler_params=pltpu.CompilerParams(
            dimension_semantics=("parallel",),   # shard batch tiles across TCs on v7x
        ),
        cost_estimate=pl.CostEstimate(
            flops=flops, transcendentals=0, bytes_accessed=bytes_accessed),
    )(z, w1, b1, w2, b2, w3, b3)

    return out


def init_params(key, noise_dim, phase_dim, n_embd):
    """Deterministic init mirroring nn.Linear default (uniform +/- 1/sqrt(fan_in)).

    Weights are stored PyTorch-style (out_dim, in_dim); biases as (out_dim, 1).
    NOTE: like the PyTorch module, noise_dim is unused by the network itself —
    the first Linear consumes n_embd features.
    """
    del noise_dim
    keys = jax.random.split(key, 6)

    def linear(kw, kb, fan_in, fan_out):
        bound = 1.0 / jnp.sqrt(jnp.float32(fan_in))
        w = jax.random.uniform(kw, (fan_out, fan_in), jnp.float32, -bound, bound)
        b = jax.random.uniform(kb, (fan_out, 1), jnp.float32, -bound, bound)
        return w, b

    w1, b1 = linear(keys[0], keys[1], n_embd, n_embd)
    w2, b2 = linear(keys[2], keys[3], n_embd, 2 * n_embd)
    w3, b3 = linear(keys[4], keys[5], 2 * n_embd, phase_dim)
    return {"w1": w1, "b1": b1, "w2": w2, "b2": b2, "w3": w3, "b3": b3}


def _reference_forward(z, p):
    """Plain-JAX reference in standard (batch, features) layout."""
    h1 = _leaky_relu(z @ p["w1"].T + p["b1"].T, SLOPE)
    h2 = _leaky_relu(h1 @ p["w2"].T + p["b2"].T, SLOPE)
    return h2 @ p["w3"].T + p["b3"].T


if __name__ == "__main__":
    key = jax.random.PRNGKey(0)
    k_params, k_z = jax.random.split(key)

    batch = 8
    noise_dim = 16      # unused by the network (mirrors the PyTorch module)
    phase_dim = 32
    n_embd = N_EMBD     # 16

    params = init_params(k_params, noise_dim, phase_dim, n_embd)
    z = jax.random.normal(k_z, (batch, n_embd), dtype=jnp.float32)

    out = trans_generator_forward(z, params)
    out = jax.block_until_ready(out)

    ref = _reference_forward(z, params)
    assert out.shape == (batch, phase_dim)
    assert jnp.allclose(out, ref, atol=1e-5, rtol=1e-5)

    # Also exercise the multi-tile grid path with a ragged last tile
    # (B=1100 -> tile 640, grid of 2, second tile partially masked).
    big_b = 1100
    z_big = jax.random.normal(k_z, (big_b, n_embd), dtype=jnp.float32)
    out_big = jax.block_until_ready(trans_generator_forward(z_big, params))
    ref_big = _reference_forward(z_big, params)
    assert out_big.shape == (big_b, phase_dim)
    assert jnp.allclose(out_big, ref_big, atol=1e-4, rtol=1e-4)

    print("KERNEL_OK")
</pallas_src>

<mosaic_0001>
module attributes {stable_mosaic.version = 11 : i64} {
  func.func @_trans_generator_kernel(%arg0: i32, %arg1: memref<8x16xf32, #tpu.memory_space<vmem>>, %arg2: memref<16x16xf32, #tpu.memory_space<vmem>>, %arg3: memref<16x1xf32, #tpu.memory_space<vmem>>, %arg4: memref<32x16xf32, #tpu.memory_space<vmem>>, %arg5: memref<32x1xf32, #tpu.memory_space<vmem>>, %arg6: memref<32x32xf32, #tpu.memory_space<vmem>>, %arg7: memref<32x1xf32, #tpu.memory_space<vmem>>, %arg8: memref<8x32xf32, #tpu.memory_space<vmem>>) attributes {dimension_semantics = [#tpu.dimension_semantics<parallel>], iteration_bounds = array<i64: 1>, scalar_prefetch = 0 : i64, scratch_operands = 0 : i64, tpu.core_type = #tpu.core_type<tc>, window_params = [{transform_indices = @transform_0, window_bounds = array<i64: 8, 16>}, {pipeline_mode = #tpu.pipeline_mode<synchronous>, transform_indices = @transform_1, window_bounds = array<i64: 16, 16>}, {pipeline_mode = #tpu.pipeline_mode<synchronous>, transform_indices = @transform_2, window_bounds = array<i64: 16, 1>}, {pipeline_mode = #tpu.pipeline_mode<synchronous>, transform_indices = @transform_3, window_bounds = array<i64: 32, 16>}, {pipeline_mode = #tpu.pipeline_mode<synchronous>, transform_indices = @transform_4, window_bounds = array<i64: 32, 1>}, {pipeline_mode = #tpu.pipeline_mode<synchronous>, transform_indices = @transform_5, window_bounds = array<i64: 32, 32>}, {pipeline_mode = #tpu.pipeline_mode<synchronous>, transform_indices = @transform_6, window_bounds = array<i64: 32, 1>}, {transform_indices = @transform_7, window_bounds = array<i64: 8, 32>}]} {
    %c0 = arith.constant 0 : index
    %c0_0 = arith.constant 0 : index
    %0 = vector.load %arg1[%c0, %c0_0] : memref<8x16xf32, #tpu.memory_space<vmem>>, vector<8x16xf32>
    %1 = tpu.transpose %0, [1, 0] : vector<8x16xf32> -> vector<16x8xf32>
    %c0_1 = arith.constant 0 : index
    %c0_2 = arith.constant 0 : index
    %2 = vector.load %arg2[%c0_1, %c0_2] : memref<16x16xf32, #tpu.memory_space<vmem>>, vector<16x16xf32>
    %cst = arith.constant dense<0.000000e+00> : vector<16x8xf32>
    %3 = tpu.matmul %2, %1, %cst {dimension_numbers = #tpu.dot_dimension_numbers<[1], [0], [0], [1], [0, 0, 1, 1], [], []>} : vector<16x16xf32>, vector<16x8xf32>, vector<16x8xf32> -> vector<16x8xf32>
    %c0_3 = arith.constant 0 : index
    %c0_4 = arith.constant 0 : index
    %4 = vector.load %arg3[%c0_3, %c0_4] : memref<16x1xf32, #tpu.memory_space<vmem>>, vector<16x1xf32>
    %5 = vector.broadcast %4 : vector<16x1xf32> to vector<16x8xf32>
    %6 = arith.addf %3, %5 : vector<16x8xf32>
    %cst_5 = arith.constant 0.000000e+00 : f32
    %7 = vector.broadcast %cst_5 : f32 to vector<16x8xf32>
    %8 = arith.cmpf ogt, %6, %7 : vector<16x8xf32>
    %cst_6 = arith.constant 2.000000e-01 : f32
    %9 = vector.broadcast %cst_6 : f32 to vector<16x8xf32>
    %10 = arith.mulf %9, %6 : vector<16x8xf32>
    %11 = arith.select %8, %6, %10 : vector<16x8xi1>, vector<16x8xf32>
    %c0_7 = arith.constant 0 : index
    %c0_8 = arith.constant 0 : index
    %12 = vector.load %arg4[%c0_7, %c0_8] : memref<32x16xf32, #tpu.memory_space<vmem>>, vector<32x16xf32>
    %cst_9 = arith.constant dense<0.000000e+00> : vector<32x8xf32>
    %13 = tpu.matmul %12, %11, %cst_9 {dimension_numbers = #tpu.dot_dimension_numbers<[1], [0], [0], [1], [0, 0, 1, 1], [], []>} : vector<32x16xf32>, vector<16x8xf32>, vector<32x8xf32> -> vector<32x8xf32>
    %c0_10 = arith.constant 0 : index
    %c0_11 = arith.constant 0 : index
    %14 = vector.load %arg5[%c0_10, %c0_11] : memref<32x1xf32, #tpu.memory_space<vmem>>, vector<32x1xf32>
    %15 = vector.broadcast %14 : vector<32x1xf32> to vector<32x8xf32>
    %16 = arith.addf %13, %15 : vector<32x8xf32>
    %cst_12 = arith.constant 0.000000e+00 : f32
    %17 = vector.broadcast %cst_12 : f32 to vector<32x8xf32>
    %18 = arith.cmpf ogt, %16, %17 : vector<32x8xf32>
    %cst_13 = arith.constant 2.000000e-01 : f32
    %19 = vector.broadcast %cst_13 : f32 to vector<32x8xf32>
    %20 = arith.mulf %19, %16 : vector<32x8xf32>
    %21 = arith.select %18, %16, %20 : vector<32x8xi1>, vector<32x8xf32>
    %c0_14 = arith.constant 0 : index
    %c0_15 = arith.constant 0 : index
    %22 = vector.load %arg6[%c0_14, %c0_15] : memref<32x32xf32, #tpu.memory_space<vmem>>, vector<32x32xf32>
    %cst_16 = arith.constant dense<0.000000e+00> : vector<32x8xf32>
    %23 = tpu.matmul %22, %21, %cst_16 {dimension_numbers = #tpu.dot_dimension_numbers<[1], [0], [0], [1], [0, 0, 1, 1], [], []>} : vector<32x32xf32>, vector<32x8xf32>, vector<32x8xf32> -> vector<32x8xf32>
    %c0_17 = arith.constant 0 : index
    %c0_18 = arith.constant 0 : index
    %24 = vector.load %arg7[%c0_17, %c0_18] : memref<32x1xf32, #tpu.memory_space<vmem>>, vector<32x1xf32>
    %25 = vector.broadcast %24 : vector<32x1xf32> to vector<32x8xf32>
    %26 = arith.addf %23, %25 : vector<32x8xf32>
    %27 = tpu.transpose %26, [1, 0] : vector<32x8xf32> -> vector<8x32xf32>
    %c0_19 = arith.constant 0 : index
    %c0_20 = arith.constant 0 : index
    %28 = vector.load %arg8[%c0_19, %c0_20] : memref<8x32xf32, #tpu.memory_space<vmem>>, vector<8x32xf32>
    tpu.vector_store %arg8[%c0_19, %c0_20], %27 {strides = array<i32>} : memref<8x32xf32, #tpu.memory_space<vmem>>, vector<8x32xf32>,
    return
  }
  func.func @transform_0(%arg0: i32) -> (i32, i32) {
    %c0_i32 = arith.constant 0 : i32
    %c0_i32_0 = arith.constant 0 : i32
    return %arg0, %c0_i32 : i32, i32
  }
  func.func @transform_1(%arg0: i32) -> (i32, i32) {
    %c0_i32 = arith.constant 0 : i32
    %c0_i32_0 = arith.constant 0 : i32
    %c0_i32_1 = arith.constant 0 : i32
    return %c0_i32, %c0_i32_0 : i32, i32
  }
  func.func @transform_2(%arg0: i32) -> (i32, i32) {
    %c0_i32 = arith.constant 0 : i32
    %c0_i32_0 = arith.constant 0 : i32
    %c0_i32_1 = arith.constant 0 : i32
    return %c0_i32, %c0_i32_0 : i32, i32
  }
  func.func @transform_3(%arg0: i32) -> (i32, i32) {
    %c0_i32 = arith.constant 0 : i32
    %c0_i32_0 = arith.constant 0 : i32
    %c0_i32_1 = arith.constant 0 : i32
    return %c0_i32, %c0_i32_0 : i32, i32
  }
  func.func @transform_4(%arg0: i32) -> (i32, i32) {
    %c0_i32 = arith.constant 0 : i32
    %c0_i32_0 = arith.constant 0 : i32
    %c0_i32_1 = arith.constant 0 : i32
    return %c0_i32, %c0_i32_0 : i32, i32
  }
  func.func @transform_5(%arg0: i32) -> (i32, i32) {
    %c0_i32 = arith.constant 0 : i32
    %c0_i32_0 = arith.constant 0 : i32
    %c0_i32_1 = arith.constant 0 : i32
    return %c0_i32, %c0_i32_0 : i32, i32
  }
  func.func @transform_6(%arg0: i32) -> (i32, i32) {
    %c0_i32 = arith.constant 0 : i32
    %c0_i32_0 = arith.constant 0 : i32
    %c0_i32_1 = arith.constant 0 : i32
    return %c0_i32, %c0_i32_0 : i32, i32
  }
  func.func @transform_7(%arg0: i32) -> (i32, i32) {
    %c0_i32 = arith.constant 0 : i32
    %c0_i32_0 = arith.constant 0 : i32
    return %arg0, %c0_i32 : i32, i32
  }
}

</mosaic_0001>

<bundles_post_ra>
// kernel: tpu_custom_call.1
= control target key start
LH: loop header
LB: loop body
LE: loop exit
PB: predicated region body
PF: predicated region fallthrough
CT: control target
= control target key end

     0   :  { %vm42_vm0 = vcmask 130048   ;;  %v541_v4 = vmov 0   ;;  %s671_s0 = inlined_call_operand.vmem [shape: f32[8,16], index: 0, kind: input, shape index: {}]   ;;  %s672_s1 = inlined_call_operand.vmem [shape: f32[16,16], index: 1, kind: input, shape index: {}]   ;;  %s673_s2 = inlined_call_operand.vmem [shape: f32[16,1], index: 2, kind: input, shape index: {}]   ;;  %s674_s3 = inlined_call_operand.vmem [shape: f32[32,16], index: 3, kind: input, shape index: {}]   ;;  %s675_s4 = inlined_call_operand.vmem [shape: f32[32,1], index: 4, kind: input, shape index: {}]   ;;  %s676_s5 = inlined_call_operand.vmem [shape: f32[32,32], index: 5, kind: input, shape index: {}]   ;;  %s677_s6 = inlined_call_operand.vmem [shape: f32[32,1], index: 6, kind: input, shape index: {}]   ;;  %s678_s7 = inlined_call_operand.hbm [shape: f32[8,32], index: 7, kind: output, shape index: {}]  }
   0x1   :  { %v27_v0 = vld [vmem:[%s671_s0] sm:$0xff]  ;;  %v29_v3 = vld [vmem:[%s672_s1 + $0x8] sm:$0xff]  ;;  %515 = vset.pattern.permute.xlu0 %v541_v4 }
   0x2   :  { %v28_v1 = vld [vmem:[%s672_s1] sm:$0xff]  ;;  %471 = vmatprep.subr.msk.mxu1 %vm42_vm0, %v27_v0 }
   0x3   :  { %473 = vmatprep.mubr.msk.f32.mxu1 %vm42_vm0, %v28_v1  ;;  %v30_v2 = vld [vmem:[%s673_s2] sm:$0xff]  ;;  %472 = vmatpush3.xpose.msk.msra.mxu1 %vm42_vm0, %v27_v0 }
   0x4   :  { %12 = vsyncpa [#allocation3], 0  ;;  %34 = vperm.xlu0 %515, %v30_v2   ;;  %516 = vset.pattern.permute.xlu1 %v541_v4  ;;  %v31_v5 = vld [vmem:[%s673_s2 + $0x8] sm:$0xff]  ;;  %v139_v6 = vld [vmem:[%s675_s4 + $0x10] sm:$0xff]  ;;  %vm298_vm3 = vcmask 261120   ;;  %s542_s13 = smov [#allocation2]  }
   0x5   :  { %v274_v7 = vld [vmem:[%s677_s6] sm:$0xff]  ;;  %v276_v8 = vld [vmem:[%s677_s6 + $0x10] sm:$0xff]  ;;  %v138_v11 = vld [vmem:[%s675_s4 + $0x8] sm:$0xff] }
   0x6   :  { %474 = vmatmul.mubr.msk.f32.vlgmr.msra.gmra.mrb[0].mxu1 %vm42_vm0, %v29_v3  ;;  %v133_v9 = vld [vmem:[%s674_s3] sm:$0xff]  ;;  %v140_v12 = vld [vmem:[%s675_s4 + $0x18] sm:$0xff]  ;;  %v275_v13 = vld [vmem:[%s677_s6 + $0x8] sm:$0xff] }
   0x7   :  { %480 = vmatprep.mubr.msk.f32.mxu1 %vm42_vm0, %v133_v9  ;;  %v137_v10 = vld [vmem:[%s675_s4] sm:$0xff]  ;;  %v277_v14 = vld [vmem:[%s677_s6 + $0x18] sm:$0xff]  ;;  %v134_v26 = vld [vmem:[%s674_s3 + $0x8] sm:$0xff] }
   0x8   :  { %39 = vperm.xlu0 %515, %v31_v5   ;;  %143 = vperm.xlu1 %516, %v137_v10   ;;  %v135_v27 = vld [vmem:[%s674_s3 + $0x10] sm:$0xff]  ;;  %v136_v28 = vld [vmem:[%s674_s3 + $0x18] sm:$0xff]  ;;  %v270_v29 = vld [vmem:[%s676_s5] sm:$0xff] }
   0x9   :  { %494 = vmatprep.mubr.msk.f32.mxu0 %vm298_vm3, %v270_v29  ;;  %v271_v52 = vld [vmem:[%s676_s5 + $0x8] sm:$0xff]  ;;  %v272_v53 = vld [vmem:[%s676_s5 + $0x10] sm:$0xff]  ;;  %v273_v54 = vld [vmem:[%s676_s5 + $0x18] sm:$0xff]  ;;  %s435_s5 = sshll.u32 %s542_s13, 4  ;;  %s436_s5 = int_to_ptr.vmem [resolvable:$true] %s435_s5 }
   0xa   :  { %s517_s1 = scalar_lea.vmem %s436_s5, 128  ;;  %p522_p1 = scmp.lt.s32.totalorder %s436_s5, %s436_s5 }
   0xb   :  { %p518_p0 = scmp.ne.s32.totalorder %s436_s5, %s517_s1  ;;  %p523_p2 = scmp.lt.s32.totalorder %s517_s1, %s517_s1 }
   0xc   :  { %153 = vperm.xlu0 %515, %v139_v6   ;;  %148 = vperm.xlu1 %516, %v138_v11  }
   0xd   :  { %p524_p3 = por %p523_p2, %p522_p1 }
   0xf   :  { %p525_p4 = pnand %p524_p3, %p518_p0 }
  0x10   :  { %280 = vperm.xlu0 %515, %v274_v7   ;;  %158 = vperm.xlu1 %516, %v140_v12  }
  0x14   :  { %290 = vperm.xlu0 %515, %v276_v8   ;;  %285 = vperm.xlu1 %516, %v275_v13  }
  0x18   :  { %295 = vperm.xlu1 %516, %v277_v14  }
  0x83   :  { %v35_v15 = vpop.permute.xlu0 %34 }
  0x87   :  { %v40_v16 = vpop.permute.xlu0 %39  ;;  %v144_v30 = vpop.permute.xlu1 %143 }
  0x8b   :  { %v149_v31 = vpop.permute.xlu1 %148  ;;  %v154_v40 = vpop.permute.xlu0 %153 }
  0x8f   :  { %v159_v37 = vpop.permute.xlu1 %158  ;;  %v281_v56 = vpop.permute.xlu0 %280 }
  0x93   :  { %v286_v60 = vpop.permute.xlu1 %285  ;;  %v291_v63 = vpop.permute.xlu0 %290 }
  0x97   :  { %v296_v1 = vpop.permute.xlu1 %295 }
  0xd9   :  { %v475_v17 = vpop.f32.mrb[0].mxu1 }
  0xda   :  { %v124_v18 = vadd.f32 %v475_v17, %v40_v16  ;;  %v118_v19 = vpop.f32.mrb[1].mxu1 }
  0xdb   :  { %v119_v20 = vadd.f32 %v118_v19, %v35_v15 }
  0xdc   :  { %vm128_vm1 = vcmp.gt.f32.partialorder %v124_v18, 0.0  ;;  %v130_v21 = vmul.f32 0.2, %v124_v18 }
  0xdd   :  { %vm127_vm2 = vcmp.gt.f32.partialorder %v119_v20, 0.0  ;;  %v129_v22 = vmul.f32 0.2, %v119_v20 }
  0xde   :  { %v132_v23 = vsel %vm128_vm1, %v124_v18, %v130_v21 }
  0xdf   :  { %v131_v24 = vsel %vm127_vm2, %v119_v20, %v129_v22 }
  0xe0   :  { %v500_v25 = vpack.c.bf16 %v132_v23, %v131_v24 }
  0xe2   :  { %501 = vmatprep.subr.bf16.mxu1 %v500_v25 }
  0xe3   :  { %503 = vmatpush3.bf16.msra.mxu1 %v500_v25 }
  0xe6   :  { %481 = vmatmul.mubr.msk.f32.vlgmr.msra.gmra.mrb[2].mxu1 %vm42_vm0, %v134_v26 }
  0xe7   :  { %483 = vmatprep.mubr.msk.f32.mxu1 %vm42_vm0, %v135_v27 }
  0xea   :  { %484 = vmatmul.mubr.msk.f32.gmra.mrb[4].mxu1 %vm42_vm0, %v136_v28 }
 0x1b9   :  { %v482_v32 = vpop.f32.mrb[2].mxu1 }
 0x1ba   :  { %v245_v33 = vadd.f32 %v482_v32, %v149_v31  ;;  %v239_v34 = vpop.f32.mrb[3].mxu1 }
 0x1bb   :  { %v240_v35 = vadd.f32 %v239_v34, %v144_v30 }
 0x1bc   :  { %v263_v36 = vmul.f32 0.2, %v245_v33  ;;  %vm259_vm4 = vcmp.gt.f32.partialorder %v245_v33, 0.0 }
 0x1bd   :  { %v262_v38 = vmul.f32 0.2, %v240_v35  ;;  %v485_v39 = vpop.f32.mrb[4].mxu1  ;;  %vm258_vm5 = vcmp.gt.f32.partialorder %v240_v35, 0.0 }
 0x1be   :  { %v255_v41 = vadd.f32 %v485_v39, %v159_v37  ;;  %v249_v42 = vpop.f32.mrb[5].mxu1  ;;  %v267_v43 = vsel %vm259_vm4, %v245_v33, %v263_v36 }
 0x1bf   :  { %v250_v44 = vadd.f32 %v249_v42, %v154_v40  ;;  %v266_v45 = vsel %vm258_vm5, %v240_v35, %v262_v38 }
 0x1c0   :  { %vm261_vm6 = vcmp.gt.f32.partialorder %v255_v41, 0.0  ;;  %v265_v46 = vmul.f32 0.2, %v255_v41  ;;  %v504_v47 = vpack.c.bf16 %v267_v43, %v266_v45 }
 0x1c1   :  { %vm260_vm7 = vcmp.gt.f32.partialorder %v250_v44, 0.0  ;;  %v264_v48 = vmul.f32 0.2, %v250_v44 }
 0x1c2   :  { %505 = vmatprep.subr.bf16.mxu0 %v504_v47  ;;  %v269_v49 = vsel %vm261_vm6, %v255_v41, %v265_v46 }
 0x1c3   :  { %507 = vmatpush3.bf16.msra.mxu0 %v504_v47  ;;  %v268_v50 = vsel %vm260_vm7, %v250_v44, %v264_v48 }
 0x1c4   :  { %v508_v51 = vpack.c.bf16 %v269_v49, %v268_v50 }
 0x1c6   :  { %509 = vmatprep.subr.bf16.mxu0 %v508_v51 }
 0x1c7   :  { %511 = vmatpush3.bf16.msra.mxu0 %v508_v51 }
 0x1ca   :  { %495 = vmatmul.mubr.msk.f32.vlgmr.msra.gmra.mrb[0].mxu0 %vm298_vm3, %v271_v52 }
 0x1cb   :  { %497 = vmatprep.mubr.msk.f32.mxu0 %vm298_vm3, %v272_v53 }
 0x1ce   :  { %498 = vmatmul.mubr.msk.f32.gmra.mrb[2].mxu0 %vm298_vm3, %v273_v54 }
 0x29d   :  { %v496_v55 = vpop.f32.mrb[0].mxu0 }
 0x29e   :  { %v377_v57 = vpop.f32.mrb[1].mxu0  ;;  %v383_v62 = vadd.f32 %v496_v55, %v286_v60 }
 0x29f   :  { %v378_v58 = vadd.f32 %v377_v57, %v281_v56 }
 0x2a1   :  { %v499_v59 = vpop.f32.mrb[2].mxu0  ;;  %396 = vxpose.xlu0.b32.start [1/4] (short) (narrow) %v378_v58, 8 }
 0x2a2   :  { %v387_v61 = vpop.f32.mrb[3].mxu0  ;;  %v393_v2 = vadd.f32 %v499_v59, %v296_v1 }
 0x2a3   :  { %v388_v0 = vadd.f32 %v387_v61, %v291_v63 }
 0x2a5   :  { %397 = vxpose.xlu0.b32.cont [2/4] (short) (narrow) %v383_v62, 8 }
 0x2a9   :  { %398 = vxpose.xlu0.b32.cont [3/4] (short) (narrow) %v388_v0, 8 }
 0x2ad   :  { %399 = vxpose.xlu0.b32.end [4/4] (short) (narrow) %v393_v2, 8 }
 0x321   :  { %v412_v3 = vpop.trf.xlu0 }
 0x322   :  { %428 = vst.msk [vmem:[#allocation2] sm:$0xff] %vm298_vm3, %v412_v3 }
 0x323   :  { %528 = shalt.err (!%p525_p4)
}
 0x324   :  { %s529_s2 = scalar_lea.hbm %s678_s7, 128 }
 0x325   :  { %p530_p5 = scmp.ne.s32.totalorder %s678_s7, %s529_s2  ;;  %p533_p6 = scmp.lt.u32.totalorder %s529_s2, %s678_s7 }
 0x327   :  { %p535_p7 = pnand %p533_p6, %p530_p5 }
 0x329   :  { %538 = shalt.err (!%p535_p7)
}
 0x32a   :  { %438 = dma.vmem_to_hbm [thread:$0]  %s436_s5, 128, %s678_s7, [#allocation3]  }
 0x32b   :  { %539 = dma.done.wait [#allocation3], 128  }
 0x32c   :  { %540 = vsyncadd [#allocation3], 4294967168 }
 0x32d   :  { %442 = vsyncpa [#allocation3], 1 }

</bundles_post_ra>
